<compile_context>
chip_gen: v5e
topology: v5e:2x2
jax: 0.10.0
libtpu: 0.0.40
codegen_flags: <defaults>
</compile_context>

<pallas_src>
import functools

import jax
import jax.numpy as jnp
from jax.experimental import pallas as pl
from jax.experimental.pallas import tpu as pltpu

SMOOTH = 1e-6   # DiceLoss smooth; CE is unweighted (weight=None)
LANES = 128


def _dice_ce_kernel(pred_ref, tgt_ref, ce_out_ref, dice_out_ref,
                    inter_s, union_s, ce_s, *, needs_mask):
    # pred_ref: (1, C, TC, 128) native dtype    tgt_ref: (1, TC, 128) int
    # ce_out_ref / dice_out_ref: (1, 8, 128) f32 per-batch partial sums
    # inter_s / union_s: SMEM (C,) f32          ce_s: SMEM (1,) f32
    j = pl.program_id(1)
    n_chunks = pl.num_programs(1)
    C = pred_ref.shape[1]

    @pl.when(j == 0)
    def _init():
        for c in range(C):
            inter_s[c] = jnp.float32(0.0)
            union_s[c] = jnp.float32(0.0)
        ce_s[0] = jnp.float32(0.0)

    t = tgt_ref[0]                                        # (TC, 128) int labels
    # Upcast inside the kernel (inputs arrive in their native dtype).
    p = [pred_ref[0, c].astype(jnp.float32) for c in range(C)]

    # Class-axis max / sum as C-unrolled elementwise ops on full (TC,128) tiles.
    m = p[0]
    for c in range(1, C):
        m = jnp.maximum(m, p[c])
    e = [jnp.exp(pc - m) for pc in p]                     # (TC, 128) each
    s = e[0]
    for c in range(1, C):
        s = s + e[c]
    # One reciprocal per pixel (EUP) + VPU multiplies, not C divides per pixel.
    inv_s = pl.reciprocal(s, approx=True)
    lse = m + jnp.log(s)                                  # log-sum-exp, (TC,128)

    if needs_mask:
        valid = (t >= 0).astype(jnp.float32)              # wrapper pads target with -1

    picked = jnp.zeros_like(m)
    for c in range(C):
        oh_c = (t == c).astype(jnp.float32)               # one-hot slice for class c
        sm_c = e[c] * inv_s                               # softmax prob of class c
        if needs_mask:
            sm_c = sm_c * valid
        picked = picked + p[c] * oh_c
        inter_s[c] += jnp.sum(sm_c * oh_c)
        union_s[c] += jnp.sum(sm_c + oh_c)

    ce_term = lse - picked
    if needs_mask:
        ce_term = ce_term * valid
    ce_s[0] += jnp.sum(ce_term)

    @pl.when(j == n_chunks - 1)
    def _finalize():
        dice_sum = jnp.float32(0.0)
        for c in range(C):
            dice_sum = dice_sum + (2.0 * inter_s[c] + SMOOTH) / (union_s[c] + SMOOTH)
        ones = jnp.ones(ce_out_ref.shape, jnp.float32)
        ce_out_ref[...] = ones * ce_s[0]                  # per-batch CE pixel-sum
        dice_out_ref[...] = ones * dice_sum               # per-batch sum of dice coeffs


def _rows_per_chunk(rows):
    # Largest multiple of 8 sublane rows (<= 32, i.e. <= 4096 pixels) that
    # divides `rows`; otherwise fall back to the full extent (always legal).
    best = None
    for tc in range(8, min(rows, 32) + 1, 8):
        if rows % tc == 0:
            best = tc
    return best if best is not None else rows


def dice_ce_loss(pred, target):
    """pred: (N, C, H, W) float, target: (N, H, W) int -> scalar DiceCE loss."""
    N, C, H, W = pred.shape
    HW = H * W
    pad = (-HW) % LANES
    rows = (HW + pad) // LANES

    # No dtype casts in the wrapper: pred keeps its native dtype (upcast in
    # kernel), target stays integer.  Reshapes are metadata-only; padding (if
    # any) marks invalid pixels with target = -1, masked inside the kernel.
    p = pred.reshape(N, C, HW)
    t = target.reshape(N, HW)
    if pad:
        p = jnp.pad(p, ((0, 0), (0, 0), (0, pad)))
        t = jnp.pad(t, ((0, 0), (0, pad)), constant_values=-1)
    p = p.reshape(N, C, rows, LANES)
    t = t.reshape(N, rows, LANES)

    tc = _rows_per_chunk(rows)
    n_chunks = rows // tc

    kernel = functools.partial(_dice_ce_kernel, needs_mask=(pad > 0))

    ce_part, dice_part = pl.pallas_call(
        kernel,
        out_shape=(
            jax.ShapeDtypeStruct((N, 8, LANES), jnp.float32),   # per-batch CE sums
            jax.ShapeDtypeStruct((N, 8, LANES), jnp.float32),   # per-batch dice sums
        ),
        grid_spec=pltpu.PrefetchScalarGridSpec(
            num_scalar_prefetch=0,
            grid=(N, n_chunks),                      # spatial reduction axis last
            in_specs=[
                pl.BlockSpec((1, C, tc, LANES), lambda i, j: (i, 0, j, 0)),
                pl.BlockSpec((1, tc, LANES), lambda i, j: (i, j, 0)),
            ],
            out_specs=[
                pl.BlockSpec((1, 8, LANES), lambda i, j: (i, 0, 0)),
                pl.BlockSpec((1, 8, LANES), lambda i, j: (i, 0, 0)),
            ],
            scratch_shapes=[
                pltpu.SMEM((C,), jnp.float32),       # per-class intersection sums
                pltpu.SMEM((C,), jnp.float32),       # per-class union sums
                pltpu.SMEM((1,), jnp.float32),       # CE pixel-sum
            ],
        ),
        compiler_params=pltpu.CompilerParams(
            # Batch axis parallel (v7x: both TensorCores); spatial-chunk
            # accumulation axis arbitrary.  Explicit VMEM limit with headroom.
            dimension_semantics=("parallel", "arbitrary"),
            vmem_limit_bytes=32 * 1024 * 1024,
        ),
    )(p, t)

    # Final scalar combine in plain JAX (f32 reduction over batch partials).
    ce_mean = jnp.sum(ce_part[:, 0, 0]) / jnp.float32(N * HW)
    dice_mean = jnp.sum(dice_part[:, 0, 0]) / jnp.float32(N * C)
    return ce_mean + (1.0 - dice_mean)


def ref_dice_ce_loss(pred, target):
    """Pure-JAX reference matching the PyTorch DiceCELoss module."""
    N, C, H, W = pred.shape
    logits = pred.reshape(N, C, H * W).astype(jnp.float32)
    tgt = target.reshape(N, H * W)
    lse = jax.nn.logsumexp(logits, axis=1)                                # (N, HW)
    picked = jnp.take_along_axis(logits, tgt[:, None, :], axis=1)[:, 0, :]
    ce = jnp.mean(lse - picked)
    sm = jax.nn.softmax(logits, axis=1)
    oh = jax.nn.one_hot(tgt, C, axis=1, dtype=jnp.float32)                # (N, C, HW)
    inter = jnp.sum(sm * oh, axis=2)
    union = jnp.sum(sm, axis=2) + jnp.sum(oh, axis=2)
    dice = (2.0 * inter + SMOOTH) / (union + SMOOTH)
    return ce + 1.0 - jnp.mean(dice)


if __name__ == "__main__":
    key = jax.random.PRNGKey(0)
    k1, k2 = jax.random.split(key)
    N, C, H, W = 2, 4, 16, 16
    pred = jax.random.normal(k1, (N, C, H, W), dtype=jnp.float32)
    target = jax.random.randint(k2, (N, H, W), 0, C, dtype=jnp.int32)

    loss = jax.block_until_ready(dice_ce_loss(pred, target))
    ref = jax.block_until_ready(ref_dice_ce_loss(pred, target))

    # Tolerance covers the approximate EUP reciprocal used for the softmax
    # normalization (dice path only; CE uses exact log-sum-exp).
    assert jnp.allclose(loss, ref, atol=5e-3, rtol=5e-3), (loss, ref)
    print("KERNEL_OK")
</pallas_src>

<mosaic_0001>
module attributes {stable_mosaic.version = 11 : i64} {
  func.func @_dice_ce_kernel(%arg0: i32, %arg1: i32, %arg2: memref<1x4x2x128xf32, #tpu.memory_space<vmem>>, %arg3: memref<1x2x128xi32, #tpu.memory_space<vmem>>, %arg4: memref<1x8x128xf32, #tpu.memory_space<vmem>>, %arg5: memref<1x8x128xf32, #tpu.memory_space<vmem>>, %arg6: memref<4xf32, #tpu.memory_space<smem>>, %arg7: memref<4xf32, #tpu.memory_space<smem>>, %arg8: memref<1xf32, #tpu.memory_space<smem>>) attributes {dimension_semantics = [#tpu.dimension_semantics<parallel>, #tpu.dimension_semantics<arbitrary>], iteration_bounds = array<i64: 2, 1>, scalar_prefetch = 0 : i64, scratch_operands = 3 : i64, tpu.core_type = #tpu.core_type<tc>, window_params = [{transform_indices = @transform_0, window_bounds = array<i64: 1, 4, 2, 128>}, {transform_indices = @transform_1, window_bounds = array<i64: 1, 2, 128>}, {transform_indices = @transform_2, window_bounds = array<i64: 1, 8, 128>}, {transform_indices = @transform_3, window_bounds = array<i64: 1, 8, 128>}]} {
    %c0_i32 = arith.constant 0 : i32
    %0 = arith.cmpi eq, %arg1, %c0_i32 : i32
    %1 = arith.extui %0 : i1 to i32
    %c0_i32_0 = arith.constant 0 : i32
    %2 = arith.cmpi ne, %1, %c0_i32_0 : i32
    scf.if %2 {
      %cst_46 = arith.constant 0.000000e+00 : f32
      %c0_47 = arith.constant 0 : index
      %134 = memref.load %arg6[%c0_47] : memref<4xf32, #tpu.memory_space<smem>>
      memref.store %cst_46, %arg6[%c0_47] : memref<4xf32, #tpu.memory_space<smem>>
      %cst_48 = arith.constant 0.000000e+00 : f32
      %c0_49 = arith.constant 0 : index
      %135 = memref.load %arg7[%c0_49] : memref<4xf32, #tpu.memory_space<smem>>
      memref.store %cst_48, %arg7[%c0_49] : memref<4xf32, #tpu.memory_space<smem>>
      %cst_50 = arith.constant 0.000000e+00 : f32
      %c1_51 = arith.constant 1 : index
      %136 = memref.load %arg6[%c1_51] : memref<4xf32, #tpu.memory_space<smem>>
      memref.store %cst_50, %arg6[%c1_51] : memref<4xf32, #tpu.memory_space<smem>>
      %cst_52 = arith.constant 0.000000e+00 : f32
      %c1_53 = arith.constant 1 : index
      %137 = memref.load %arg7[%c1_53] : memref<4xf32, #tpu.memory_space<smem>>
      memref.store %cst_52, %arg7[%c1_53] : memref<4xf32, #tpu.memory_space<smem>>
      %cst_54 = arith.constant 0.000000e+00 : f32
      %c2_55 = arith.constant 2 : index
      %138 = memref.load %arg6[%c2_55] : memref<4xf32, #tpu.memory_space<smem>>
      memref.store %cst_54, %arg6[%c2_55] : memref<4xf32, #tpu.memory_space<smem>>
      %cst_56 = arith.constant 0.000000e+00 : f32
      %c2_57 = arith.constant 2 : index
      %139 = memref.load %arg7[%c2_57] : memref<4xf32, #tpu.memory_space<smem>>
      memref.store %cst_56, %arg7[%c2_57] : memref<4xf32, #tpu.memory_space<smem>>
      %cst_58 = arith.constant 0.000000e+00 : f32
      %c3_59 = arith.constant 3 : index
      %140 = memref.load %arg6[%c3_59] : memref<4xf32, #tpu.memory_space<smem>>
      memref.store %cst_58, %arg6[%c3_59] : memref<4xf32, #tpu.memory_space<smem>>
      %cst_60 = arith.constant 0.000000e+00 : f32
      %c3_61 = arith.constant 3 : index
      %141 = memref.load %arg7[%c3_61] : memref<4xf32, #tpu.memory_space<smem>>
      memref.store %cst_60, %arg7[%c3_61] : memref<4xf32, #tpu.memory_space<smem>>
      %cst_62 = arith.constant 0.000000e+00 : f32
      %c0_63 = arith.constant 0 : index
      %142 = memref.load %arg8[%c0_63] : memref<1xf32, #tpu.memory_space<smem>>
      memref.store %cst_62, %arg8[%c0_63] : memref<1xf32, #tpu.memory_space<smem>>
    } else {
    }
    %c0 = arith.constant 0 : index
    %c0_1 = arith.constant 0 : index
    %c0_2 = arith.constant 0 : index
    %3 = vector.load %arg3[%c0, %c0_1, %c0_2] : memref<1x2x128xi32, #tpu.memory_space<vmem>>, vector<1x2x128xi32>
    %4 = vector.shape_cast %3 : vector<1x2x128xi32> to vector<2x128xi32>
    %c0_3 = arith.constant 0 : index
    %c0_4 = arith.constant 0 : index
    %c0_5 = arith.constant 0 : index
    %c0_6 = arith.constant 0 : index
    %5 = vector.load %arg2[%c0_3, %c0_4, %c0_5, %c0_6] : memref<1x4x2x128xf32, #tpu.memory_space<vmem>>, vector<1x1x2x128xf32>
    %6 = vector.shape_cast %5 : vector<1x1x2x128xf32> to vector<2x128xf32>
    %c0_7 = arith.constant 0 : index
    %c1 = arith.constant 1 : index
    %c0_8 = arith.constant 0 : index
    %c0_9 = arith.constant 0 : index
    %7 = vector.load %arg2[%c0_7, %c1, %c0_8, %c0_9] : memref<1x4x2x128xf32, #tpu.memory_space<vmem>>, vector<1x1x2x128xf32>
    %8 = vector.shape_cast %7 : vector<1x1x2x128xf32> to vector<2x128xf32>
    %c0_10 = arith.constant 0 : index
    %c2 = arith.constant 2 : index
    %c0_11 = arith.constant 0 : index
    %c0_12 = arith.constant 0 : index
    %9 = vector.load %arg2[%c0_10, %c2, %c0_11, %c0_12] : memref<1x4x2x128xf32, #tpu.memory_space<vmem>>, vector<1x1x2x128xf32>
    %10 = vector.shape_cast %9 : vector<1x1x2x128xf32> to vector<2x128xf32>
    %c0_13 = arith.constant 0 : index
    %c3 = arith.constant 3 : index
    %c0_14 = arith.constant 0 : index
    %c0_15 = arith.constant 0 : index
    %11 = vector.load %arg2[%c0_13, %c3, %c0_14, %c0_15] : memref<1x4x2x128xf32, #tpu.memory_space<vmem>>, vector<1x1x2x128xf32>
    %12 = vector.shape_cast %11 : vector<1x1x2x128xf32> to vector<2x128xf32>
    %13 = arith.maximumf %6, %8 : vector<2x128xf32>
    %14 = arith.maximumf %13, %10 : vector<2x128xf32>
    %15 = arith.maximumf %14, %12 : vector<2x128xf32>
    %16 = arith.subf %6, %15 : vector<2x128xf32>
    %17 = math.exp %16 : vector<2x128xf32>
    %18 = arith.subf %8, %15 : vector<2x128xf32>
    %19 = math.exp %18 : vector<2x128xf32>
    %20 = arith.subf %10, %15 : vector<2x128xf32>
    %21 = math.exp %20 : vector<2x128xf32>
    %22 = arith.subf %12, %15 : vector<2x128xf32>
    %23 = math.exp %22 : vector<2x128xf32>
    %24 = arith.addf %17, %19 : vector<2x128xf32>
    %25 = arith.addf %24, %21 : vector<2x128xf32>
    %26 = arith.addf %25, %23 : vector<2x128xf32>
    %27 = tpu.reciprocal %26 {approx = true} : vector<2x128xf32> -> vector<2x128xf32>
    %28 = math.log %26 : vector<2x128xf32>
    %29 = arith.addf %15, %28 : vector<2x128xf32>
    %cst = arith.constant 0.000000e+00 : f32
    %30 = vector.broadcast %cst : f32 to vector<2x128xf32>
    %c0_i32_16 = arith.constant 0 : i32
    %31 = vector.broadcast %c0_i32_16 : i32 to vector<2x128xi32>
    %32 = arith.cmpi eq, %4, %31 : vector<2x128xi32>
    %33 = arith.extui %32 : vector<2x128xi1> to vector<2x128xi32>
    %34 = arith.sitofp %33 : vector<2x128xi32> to vector<2x128xf32>
    %35 = arith.mulf %17, %27 : vector<2x128xf32>
    %36 = arith.mulf %6, %34 : vector<2x128xf32>
    %37 = arith.addf %30, %36 : vector<2x128xf32>
    %c0_17 = arith.constant 0 : index
    %38 = memref.load %arg6[%c0_17] : memref<4xf32, #tpu.memory_space<smem>>
    %39 = arith.mulf %35, %34 : vector<2x128xf32>
    %40 = vector.shape_cast %39 : vector<2x128xf32> to vector<1x2x128xf32>
    %cst_18 = arith.constant dense<0.000000e+00> : vector<1xf32>
    %41 = vector.multi_reduction <add>, %40, %cst_18 [1, 2] : vector<1x2x128xf32> to vector<1xf32>
    %42 = vector.shape_cast %41 : vector<1xf32> to vector<1x1x1xf32>
    %43 = vector.extract %42[0, 0, 0] : f32 from vector<1x1x1xf32>
    %44 = arith.addf %38, %43 : f32
    %c0_19 = arith.constant 0 : index
    %45 = memref.load %arg6[%c0_19] : memref<4xf32, #tpu.memory_space<smem>>
    memref.store %44, %arg6[%c0_19] : memref<4xf32, #tpu.memory_space<smem>>
    %c0_20 = arith.constant 0 : index
    %46 = memref.load %arg7[%c0_20] : memref<4xf32, #tpu.memory_space<smem>>
    %47 = arith.addf %35, %34 : vector<2x128xf32>
    %48 = vector.shape_cast %47 : vector<2x128xf32> to vector<1x2x128xf32>
    %cst_21 = arith.constant dense<0.000000e+00> : vector<1xf32>
    %49 = vector.multi_reduction <add>, %48, %cst_21 [1, 2] : vector<1x2x128xf32> to vector<1xf32>
    %50 = vector.shape_cast %49 : vector<1xf32> to vector<1x1x1xf32>
    %51 = vector.extract %50[0, 0, 0] : f32 from vector<1x1x1xf32>
    %52 = arith.addf %46, %51 : f32
    %c0_22 = arith.constant 0 : index
    %53 = memref.load %arg7[%c0_22] : memref<4xf32, #tpu.memory_space<smem>>
    memref.store %52, %arg7[%c0_22] : memref<4xf32, #tpu.memory_space<smem>>
    %c1_i32 = arith.constant 1 : i32
    %54 = vector.broadcast %c1_i32 : i32 to vector<2x128xi32>
    %55 = arith.cmpi eq, %4, %54 : vector<2x128xi32>
    %56 = arith.extui %55 : vector<2x128xi1> to vector<2x128xi32>
    %57 = arith.sitofp %56 : vector<2x128xi32> to vector<2x128xf32>
    %58 = arith.mulf %19, %27 : vector<2x128xf32>
    %59 = arith.mulf %8, %57 : vector<2x128xf32>
    %60 = arith.addf %37, %59 : vector<2x128xf32>
    %c1_23 = arith.constant 1 : index
    %61 = memref.load %arg6[%c1_23] : memref<4xf32, #tpu.memory_space<smem>>
    %62 = arith.mulf %58, %57 : vector<2x128xf32>
    %63 = vector.shape_cast %62 : vector<2x128xf32> to vector<1x2x128xf32>
    %cst_24 = arith.constant dense<0.000000e+00> : vector<1xf32>
    %64 = vector.multi_reduction <add>, %63, %cst_24 [1, 2] : vector<1x2x128xf32> to vector<1xf32>
    %65 = vector.shape_cast %64 : vector<1xf32> to vector<1x1x1xf32>
    %66 = vector.extract %65[0, 0, 0] : f32 from vector<1x1x1xf32>
    %67 = arith.addf %61, %66 : f32
    %c1_25 = arith.constant 1 : index
    %68 = memref.load %arg6[%c1_25] : memref<4xf32, #tpu.memory_space<smem>>
    memref.store %67, %arg6[%c1_25] : memref<4xf32, #tpu.memory_space<smem>>
    %c1_26 = arith.constant 1 : index
    %69 = memref.load %arg7[%c1_26] : memref<4xf32, #tpu.memory_space<smem>>
    %70 = arith.addf %58, %57 : vector<2x128xf32>
    %71 = vector.shape_cast %70 : vector<2x128xf32> to vector<1x2x128xf32>
    %cst_27 = arith.constant dense<0.000000e+00> : vector<1xf32>
    %72 = vector.multi_reduction <add>, %71, %cst_27 [1, 2] : vector<1x2x128xf32> to vector<1xf32>
    %73 = vector.shape_cast %72 : vector<1xf32> to vector<1x1x1xf32>
    %74 = vector.extract %73[0, 0, 0] : f32 from vector<1x1x1xf32>
    %75 = arith.addf %69, %74 : f32
    %c1_28 = arith.constant 1 : index
    %76 = memref.load %arg7[%c1_28] : memref<4xf32, #tpu.memory_space<smem>>
    memref.store %75, %arg7[%c1_28] : memref<4xf32, #tpu.memory_space<smem>>
    %c2_i32 = arith.constant 2 : i32
    %77 = vector.broadcast %c2_i32 : i32 to vector<2x128xi32>
    %78 = arith.cmpi eq, %4, %77 : vector<2x128xi32>
    %79 = arith.extui %78 : vector<2x128xi1> to vector<2x128xi32>
    %80 = arith.sitofp %79 : vector<2x128xi32> to vector<2x128xf32>
    %81 = arith.mulf %21, %27 : vector<2x128xf32>
    %82 = arith.mulf %10, %80 : vector<2x128xf32>
    %83 = arith.addf %60, %82 : vector<2x128xf32>
    %c2_29 = arith.constant 2 : index
    %84 = memref.load %arg6[%c2_29] : memref<4xf32, #tpu.memory_space<smem>>
    %85 = arith.mulf %81, %80 : vector<2x128xf32>
    %86 = vector.shape_cast %85 : vector<2x128xf32> to vector<1x2x128xf32>
    %cst_30 = arith.constant dense<0.000000e+00> : vector<1xf32>
    %87 = vector.multi_reduction <add>, %86, %cst_30 [1, 2] : vector<1x2x128xf32> to vector<1xf32>
    %88 = vector.shape_cast %87 : vector<1xf32> to vector<1x1x1xf32>
    %89 = vector.extract %88[0, 0, 0] : f32 from vector<1x1x1xf32>
    %90 = arith.addf %84, %89 : f32
    %c2_31 = arith.constant 2 : index
    %91 = memref.load %arg6[%c2_31] : memref<4xf32, #tpu.memory_space<smem>>
    memref.store %90, %arg6[%c2_31] : memref<4xf32, #tpu.memory_space<smem>>
    %c2_32 = arith.constant 2 : index
    %92 = memref.load %arg7[%c2_32] : memref<4xf32, #tpu.memory_space<smem>>
    %93 = arith.addf %81, %80 : vector<2x128xf32>
    %94 = vector.shape_cast %93 : vector<2x128xf32> to vector<1x2x128xf32>
    %cst_33 = arith.constant dense<0.000000e+00> : vector<1xf32>
    %95 = vector.multi_reduction <add>, %94, %cst_33 [1, 2] : vector<1x2x128xf32> to vector<1xf32>
    %96 = vector.shape_cast %95 : vector<1xf32> to vector<1x1x1xf32>
    %97 = vector.extract %96[0, 0, 0] : f32 from vector<1x1x1xf32>
    %98 = arith.addf %92, %97 : f32
    %c2_34 = arith.constant 2 : index
    %99 = memref.load %arg7[%c2_34] : memref<4xf32, #tpu.memory_space<smem>>
    memref.store %98, %arg7[%c2_34] : memref<4xf32, #tpu.memory_space<smem>>
    %c3_i32 = arith.constant 3 : i32
    %100 = vector.broadcast %c3_i32 : i32 to vector<2x128xi32>
    %101 = arith.cmpi eq, %4, %100 : vector<2x128xi32>
    %102 = arith.extui %101 : vector<2x128xi1> to vector<2x128xi32>
    %103 = arith.sitofp %102 : vector<2x128xi32> to vector<2x128xf32>
    %104 = arith.mulf %23, %27 : vector<2x128xf32>
    %105 = arith.mulf %12, %103 : vector<2x128xf32>
    %106 = arith.addf %83, %105 : vector<2x128xf32>
    %c3_35 = arith.constant 3 : index
    %107 = memref.load %arg6[%c3_35] : memref<4xf32, #tpu.memory_space<smem>>
    %108 = arith.mulf %104, %103 : vector<2x128xf32>
    %109 = vector.shape_cast %108 : vector<2x128xf32> to vector<1x2x128xf32>
    %cst_36 = arith.constant dense<0.000000e+00> : vector<1xf32>
    %110 = vector.multi_reduction <add>, %109, %cst_36 [1, 2] : vector<1x2x128xf32> to vector<1xf32>
    %111 = vector.shape_cast %110 : vector<1xf32> to vector<1x1x1xf32>
    %112 = vector.extract %111[0, 0, 0] : f32 from vector<1x1x1xf32>
    %113 = arith.addf %107, %112 : f32
    %c3_37 = arith.constant 3 : index
    %114 = memref.load %arg6[%c3_37] : memref<4xf32, #tpu.memory_space<smem>>
    memref.store %113, %arg6[%c3_37] : memref<4xf32, #tpu.memory_space<smem>>
    %c3_38 = arith.constant 3 : index
    %115 = memref.load %arg7[%c3_38] : memref<4xf32, #tpu.memory_space<smem>>
    %116 = arith.addf %104, %103 : vector<2x128xf32>
    %117 = vector.shape_cast %116 : vector<2x128xf32> to vector<1x2x128xf32>
    %cst_39 = arith.constant dense<0.000000e+00> : vector<1xf32>
    %118 = vector.multi_reduction <add>, %117, %cst_39 [1, 2] : vector<1x2x128xf32> to vector<1xf32>
    %119 = vector.shape_cast %118 : vector<1xf32> to vector<1x1x1xf32>
    %120 = vector.extract %119[0, 0, 0] : f32 from vector<1x1x1xf32>
    %121 = arith.addf %115, %120 : f32
    %c3_40 = arith.constant 3 : index
    %122 = memref.load %arg7[%c3_40] : memref<4xf32, #tpu.memory_space<smem>>
    memref.store %121, %arg7[%c3_40] : memref<4xf32, #tpu.memory_space<smem>>
    %123 = arith.subf %29, %106 : vector<2x128xf32>
    %c0_41 = arith.constant 0 : index
    %124 = memref.load %arg8[%c0_41] : memref<1xf32, #tpu.memory_space<smem>>
    %125 = vector.shape_cast %123 : vector<2x128xf32> to vector<1x2x128xf32>
    %cst_42 = arith.constant dense<0.000000e+00> : vector<1xf32>
    %126 = vector.multi_reduction <add>, %125, %cst_42 [1, 2] : vector<1x2x128xf32> to vector<1xf32>
    %127 = vector.shape_cast %126 : vector<1xf32> to vector<1x1x1xf32>
    %128 = vector.extract %127[0, 0, 0] : f32 from vector<1x1x1xf32>
    %129 = arith.addf %124, %128 : f32
    %c0_43 = arith.constant 0 : index
    %130 = memref.load %arg8[%c0_43] : memref<1xf32, #tpu.memory_space<smem>>
    memref.store %129, %arg8[%c0_43] : memref<1xf32, #tpu.memory_space<smem>>
    %c0_i32_44 = arith.constant 0 : i32
    %131 = arith.cmpi eq, %arg1, %c0_i32_44 : i32
    %132 = arith.extui %131 : i1 to i32
    %c0_i32_45 = arith.constant 0 : i32
    %133 = arith.cmpi ne, %132, %c0_i32_45 : i32
    scf.if %133 {
      %c0_46 = arith.constant 0 : index
      %134 = memref.load %arg6[%c0_46] : memref<4xf32, #tpu.memory_space<smem>>
      %cst_47 = arith.constant 2.000000e+00 : f32
      %135 = arith.mulf %cst_47, %134 : f32
      %cst_48 = arith.constant 9.99999997E-7 : f32
      %136 = arith.addf %135, %cst_48 : f32
      %c0_49 = arith.constant 0 : index
      %137 = memref.load %arg7[%c0_49] : memref<4xf32, #tpu.memory_space<smem>>
      %cst_50 = arith.constant 9.99999997E-7 : f32
      %138 = arith.addf %137, %cst_50 : f32
      %139 = arith.divf %136, %138 : f32
      %cst_51 = arith.constant 0.000000e+00 : f32
      %140 = arith.addf %cst_51, %139 : f32
      %c1_52 = arith.constant 1 : index
      %141 = memref.load %arg6[%c1_52] : memref<4xf32, #tpu.memory_space<smem>>
      %cst_53 = arith.constant 2.000000e+00 : f32
      %142 = arith.mulf %cst_53, %141 : f32
      %cst_54 = arith.constant 9.99999997E-7 : f32
      %143 = arith.addf %142, %cst_54 : f32
      %c1_55 = arith.constant 1 : index
      %144 = memref.load %arg7[%c1_55] : memref<4xf32, #tpu.memory_space<smem>>
      %cst_56 = arith.constant 9.99999997E-7 : f32
      %145 = arith.addf %144, %cst_56 : f32
      %146 = arith.divf %143, %145 : f32
      %147 = arith.addf %140, %146 : f32
      %c2_57 = arith.constant 2 : index
      %148 = memref.load %arg6[%c2_57] : memref<4xf32, #tpu.memory_space<smem>>
      %cst_58 = arith.constant 2.000000e+00 : f32
      %149 = arith.mulf %cst_58, %148 : f32
      %cst_59 = arith.constant 9.99999997E-7 : f32
      %150 = arith.addf %149, %cst_59 : f32
      %c2_60 = arith.constant 2 : index
      %151 = memref.load %arg7[%c2_60] : memref<4xf32, #tpu.memory_space<smem>>
      %cst_61 = arith.constant 9.99999997E-7 : f32
      %152 = arith.addf %151, %cst_61 : f32
      %153 = arith.divf %150, %152 : f32
      %154 = arith.addf %147, %153 : f32
      %c3_62 = arith.constant 3 : index
      %155 = memref.load %arg6[%c3_62] : memref<4xf32, #tpu.memory_space<smem>>
      %cst_63 = arith.constant 2.000000e+00 : f32
      %156 = arith.mulf %cst_63, %155 : f32
      %cst_64 = arith.constant 9.99999997E-7 : f32
      %157 = arith.addf %156, %cst_64 : f32
      %c3_65 = arith.constant 3 : index
      %158 = memref.load %arg7[%c3_65] : memref<4xf32, #tpu.memory_space<smem>>
      %cst_66 = arith.constant 9.99999997E-7 : f32
      %159 = arith.addf %158, %cst_66 : f32
      %160 = arith.divf %157, %159 : f32
      %161 = arith.addf %154, %160 : f32
      %cst_67 = arith.constant 1.000000e+00 : f32
      %162 = vector.broadcast %cst_67 : f32 to vector<1x8x128xf32>
      %c0_68 = arith.constant 0 : index
      %163 = memref.load %arg8[%c0_68] : memref<1xf32, #tpu.memory_space<smem>>
      %164 = vector.broadcast %163 : f32 to vector<1x8x128xf32>
      %165 = arith.mulf %162, %164 : vector<1x8x128xf32>
      %c0_69 = arith.constant 0 : index
      %c0_70 = arith.constant 0 : index
      %c0_71 = arith.constant 0 : index
      %166 = vector.load %arg4[%c0_69, %c0_70, %c0_71] : memref<1x8x128xf32, #tpu.memory_space<vmem>>, vector<1x8x128xf32>
      tpu.vector_store %arg4[%c0_69, %c0_70, %c0_71], %165 {strides = array<i32>} : memref<1x8x128xf32, #tpu.memory_space<vmem>>, vector<1x8x128xf32>,
      %167 = vector.broadcast %161 : f32 to vector<1x8x128xf32>
      %168 = arith.mulf %162, %167 : vector<1x8x128xf32>
      %c0_72 = arith.constant 0 : index
      %c0_73 = arith.constant 0 : index
      %c0_74 = arith.constant 0 : index
      %169 = vector.load %arg5[%c0_72, %c0_73, %c0_74] : memref<1x8x128xf32, #tpu.memory_space<vmem>>, vector<1x8x128xf32>
      tpu.vector_store %arg5[%c0_72, %c0_73, %c0_74], %168 {strides = array<i32>} : memref<1x8x128xf32, #tpu.memory_space<vmem>>, vector<1x8x128xf32>,
    } else {
    }
    return
  }
  func.func @transform_0(%arg0: i32, %arg1: i32) -> (i32, i32, i32, i32) {
    %c0_i32 = arith.constant 0 : i32
    %c0_i32_0 = arith.constant 0 : i32
    %c0_i32_1 = arith.constant 0 : i32
    return %arg0, %c0_i32, %arg1, %c0_i32_0 : i32, i32, i32, i32
  }
  func.func @transform_1(%arg0: i32, %arg1: i32) -> (i32, i32, i32) {
    %c0_i32 = arith.constant 0 : i32
    %c0_i32_0 = arith.constant 0 : i32
    return %arg0, %arg1, %c0_i32 : i32, i32, i32
  }
  func.func @transform_2(%arg0: i32, %arg1: i32) -> (i32, i32, i32) {
    %c0_i32 = arith.constant 0 : i32
    %c0_i32_0 = arith.constant 0 : i32
    %c0_i32_1 = arith.constant 0 : i32
    return %arg0, %c0_i32, %c0_i32_0 : i32, i32, i32
  }
  func.func @transform_3(%arg0: i32, %arg1: i32) -> (i32, i32, i32) {
    %c0_i32 = arith.constant 0 : i32
    %c0_i32_0 = arith.constant 0 : i32
    %c0_i32_1 = arith.constant 0 : i32
    return %arg0, %c0_i32, %c0_i32_0 : i32, i32, i32
  }
}

</mosaic_0001>

<bundles_post_ra>
// kernel: tpu_custom_call.1
= control target key start
LH: loop header
LB: loop body
LE: loop exit
PB: predicated region body
PF: predicated region fallthrough
CT: control target
= control target key end

     0   :  { %s1289_s0 = inlined_call_operand.hbm [shape: f32[2,4,2,128], index: 0, kind: input, shape index: {}]   ;;  %s1290_s1 = inlined_call_operand.hbm [shape: s32[2,2,128], index: 1, kind: input, shape index: {}]   ;;  %s1291_s2 = inlined_call_operand.hbm [shape: f32[2,8,128], index: 2, kind: output, shape index: {0}]   ;;  %s1292_s3 = inlined_call_operand.hbm [shape: f32[2,8,128], index: 3, kind: output, shape index: {1}]  }
   0x1   :  { %1300 = sst [smem:[#allocation23_spill]] %s1289_s0 }
   0x2   :  { %1301 = sst [smem:[#allocation24_spill]] %s1290_s1 }
   0x3   :  { %1302 = sst [smem:[#allocation25_spill]] %s1291_s2 }
   0x4   :  { %9 = vsyncpa [#allocation6], 0 }
   0x5   :  { %11 = vsyncpa [#allocation6 + $0x1], 0 }
   0x6   :  { %12 = vsyncpa [#allocation9], 0 }
   0x7   :  { %14 = vsyncpa [#allocation9 + $0x1], 0 }
   0x8   :  { %15 = vsyncpa [#allocation7], 0 }
   0x9   :  { %17 = vsyncpa [#allocation7 + $0x1], 0 }
   0xa   :  { %18 = vsyncpa [#allocation12], 0 }
   0xb   :  { %20 = vsyncpa [#allocation12 + $0x1], 0  ;;  %s1107_s12 = smov 0   ;;  %s1109_s13 = smov 0  }
   0xc   :  { %s1111_s14 = smov 0   ;;  %s1113_s15 = smov 0  }
   0xd   :  { %s1115_s16 = smov 0   ;;  %s1117_s17 = smov 0  }
   0xe LB: > { %1303 = sst [smem:[#allocation17_spill]] %s1066_s13  ;;  %s743_s18 = sadd.s32 4294967295, %s1082_s17   ;;  %s1082_s17 = sphi %s1117_s17, %s26_s17   ;;  %s1078_s16 = sphi %s1115_s16, %s1323_s16   ;;  %s1074_s15 = sphi %s1113_s15, %s1322_s15   ;;  %s1070_s14 = sphi %s1111_s14, %s1321_s14   ;;  %s1066_s13 = sphi %s1109_s13, %s1320_s13   ;;  %s1062_s12 = sphi %s1107_s12, %s1319_s12  }
   0xf   : > { %1304 = sst [smem:[#allocation18_spill]] %s1070_s14  ;;  %s744_s19 = sadd.s32 4294967294, %s1082_s17  }
  0x10   : > { %1305 = sst [smem:[#allocation19_spill]] %s1078_s16  ;;  %s38_s20 = sadd.s32 1, %s1078_s16 }
  0x11   : > { %1306 = sst [smem:[#allocation20_spill]] %s1082_s17  ;;  %s47_s21 = sadd.s32 1, %s1070_s14 }
  0x12   : > { %p40_p0 = scmp.ge.s32.totalorder %s38_s20, 2  ;;  %p54_p1 = scmp.ne.s32.totalorder %s1070_s14, %s1066_s13 }
  0x13   : > { %p55_p2 = scmp.eq.s32.totalorder %s1082_s17, 0  ;;  %p60_p3 = scmp.ne.s32.totalorder %s1066_s13, %s1062_s12 }
  0x14   : > { %s1325_s20 = smov (%p40_p0, %s38_s20), 0  ;;  %p61_p5 = scmp.eq.s32.totalorder %s743_s18, 0 }
  0x15   : > { %1307 = sst [smem:[#allocation21_spill]] %s1325_s20  ;;  %p1148_p4 = por %p55_p2, %p54_p1 }
  0x16   : > { %s42_s23 = ssub.s32 %s1078_s16, %s1325_s20  ;;  %p112_p6 = scmp.eq.s32.totalorder %s743_s18, 1 }
  0x17   : > { %p45_p7 = scmp.eq.s32.totalorder %s42_s23, 0  ;;  %p1154_p8 = por %p61_p5, %p60_p3 }
  0x18   : > { %p1158_p9 = por %p112_p6, %p54_p1  ;;  %p118_p10 = scmp.eq.s32.totalorder %s744_s19, 1 }
  0x19   : > { %s1163_s26 = scalar_select %p45_p7, %s1070_s14, %s47_s21  }
  0x1a   : > { %p1165_p11 = por %p118_p10, %p60_p3  ;;  %p746_p12 = scmp.ge.s32.totalorder %s1082_s17, 2 }
  0x1b   : > { %1311 = sst [smem:[#allocation22_spill]] %s1163_s26  ;;  %p831_p13 = scmp.lt.s32.totalorder %s1082_s17, 2 }
  0x1c   : > { %s164_s28 = sand.u32 1, %s1070_s14   ;;  %s782_s30 = sshll.u32 %s1078_s16, 3 }
  0x1d   : > { %s747_s29 = sshll.u32 %s164_s28, 3  ;;  %s1313_s0 = sld [smem:[#allocation23_spill]] }
  0x1e   : > { %s168_s7 = scalar_lea.vmem [#allocation5], %s747_s29  ;;  %p1178_p0 = pnand %p831_p13, %p1148_p4 }
  0x1f   : > { %s177_s8 = sshll.u32 %s168_s7, 4  ;;  %p752_p1 = scmp.ge.s32.totalorder %s1082_s17, 1  ;;  %s178_s8 = int_to_ptr.vmem [resolvable:$true] %s177_s8 }
  0x20   : > { %s165_s11 = scalar_lea.sflag [#allocation6], %s164_s28  ;;  %s1084_s18 = smov 32  }
  0x21   : > { %s1085_s19 = smov 2   ;;  %p205_p2 = scmp.lt.s32.totalorder %s1082_s17, 3 }
  0x22   : > { %s750_s21 = sshll.u32 %s164_s28, 1  ;;  %s751_s23 = sshll.u32 %s1078_s16, 1 }
  0x23   : > { %s174_s6 = scalar_lea.hbm %s1313_s0, %s782_s30  ;;  %p206_p3 = pnand %p752_p1, %p205_p2 }
  0x24   : > { %s175_s9 = sshll.u32 %s174_s6, 4  ;;  %s1315_s1 = sld [smem:[#allocation24_spill]]  ;;  %s176_s9 = int_to_ptr.hbm [resolvable:$true] %s175_s9 }
  0x25   : > { %820 = dma.hbm_to_vmem [thread:$0]  (!%p1178_p0), %s176_s9, 128, %s178_s8, %s165_s11, %s1084_s18, %s1084_s18, %s1085_s19  }
  0x26   : > { %s191_s4 = scalar_lea.vmem [#allocation8], %s750_s21  ;;  %s188_s7 = scalar_lea.sflag [#allocation9], %s164_s28 }
  0x27   : > { %s200_s5 = sshll.u32 %s191_s4, 4  ;;  %s1193_s8 = sand.u32 (!%p206_p3), 1, %s1066_s13   ;;  %s201_s5 = int_to_ptr.vmem [resolvable:$true] %s200_s5 }
  0x28   : > { %209 = sbr.rel (%p206_p3) target bundleno = 360 (0x168), region = 28  ;;  %s1196_s9 = sshll.u32 (!%p206_p3), %s1193_s8, 3 }
  0x29   : > { %s212_s11 = scalar_lea.sflag (!%p206_p3), [#allocation6], %s1193_s8  ;;  %s215_s18 = scalar_lea.vmem (!%p206_p3), [#allocation5], %s1196_s9 }
  0x2a   : > { %s196_s22 = scalar_lea.hbm %s1315_s1, %s751_s23 }
  0x2b   : > { %s198_s6 = sshll.u32 %s196_s22, 4  ;;  %s199_s6 = int_to_ptr.hbm [resolvable:$true] %s198_s6 }
  0x2c   : > { %823 = dma.hbm_to_vmem [thread:$0]  (!%p1178_p0), %s199_s6, 32, %s201_s5, %s188_s7  }
  0x2d   : > { %1045 = dma.done.wait (%p1154_p8), %s212_s11, 128  }
  0x2e   : > { %1047 = vsyncadd (%p1154_p8), %s212_s11, 4294967168  ;;  %s754_s28 = sshll.u32 %s1193_s8, 1  ;;  %s222_s10 = scalar_lea.sflag [#allocation9], %s1193_s8 }
  0x2f   : > { %s225_s19 = scalar_lea.vmem [#allocation8], %s754_s28 }
  0x30   : > { %1049 = dma.done.wait (%p1154_p8), %s222_s10, 32  }
  0x31   : > { %1051 = vsyncadd (%p1154_p8), %s222_s10, 4294967264  ;;  %v282_v0 = vld [vmem:[%s215_s18] sm:$0x3]  ;;  %v757_v1 = vld [vmem:[%s215_s18 + $0x2] sm:$0x3]  ;;  %v1086_v23 = vmov 0.0  }
  0x32   : > { %v758_v2 = vld [vmem:[%s215_s18 + $0x4] sm:$0x3]  ;;  %v289_v3 = vmax.f32 %v282_v0, %v757_v1  ;;  %v759_v4 = vld [vmem:[%s215_s18 + $0x6] sm:$0x3]  ;;  %v281_v21 = vld [vmem:[%s225_s19] sm:$0x3] }
  0x33   : > { %vm348_vm0 = vcmp.eq.s32.totalorder %v281_v21, 1  ;;  %vm311_vm1 = vcmp.eq.s32.totalorder %v281_v21, 0  ;;  %vm384_vm2 = vcmp.eq.s32.totalorder %v281_v21, 2  ;;  %vm319_vm3 = vcmask 1041408   ;;  %s1293_s28 = sshll.u32 %s1074_s15, 3  ;;  %s1316_s2 = sld [smem:[#allocation25_spill]] }
  0x34   : > { %v290_v5 = vmax.f32 %v289_v3, %v758_v2  ;;  %v761_v24 = vsel %vm348_vm0, 1.0, %v1086_v23  ;;  %v760_v25 = vsel %vm311_vm1, 1.0, %v1086_v23  ;;  %v764_v29 = vsel %vm384_vm2, 1.0, %v1086_v23 }
  0x35   : > { %v352_v26 = vmul.f32 %v761_v24, %v757_v1  ;;  %v315_v27 = vmul.f32 %v760_v25, %v282_v0  ;;  %v388_v33 = vmul.f32 %v764_v29, %v758_v2  ;;  %vm420_vm4 = vcmp.eq.s32.totalorder %v281_v21, 3 }
  0x36   : > { %v291_v6 = vmax.f32 %v290_v5, %v759_v4  ;;  %v767_v42 = vsel %vm420_vm4, 1.0, %v1086_v23 }
  0x37   : > { %v353_v34 = vadd.f32 %v352_v26, %v315_v27  ;;  %v424_v44 = vmul.f32 %v767_v42, %v759_v4 }
  0x38   : > { %v292_v7 = vsub.f32 %v282_v0, %v291_v6  ;;  %v295_v8 = vsub.f32 %v757_v1, %v291_v6  ;;  %v298_v9 = vsub.f32 %v758_v2, %v291_v6  ;;  %v301_v10 = vsub.f32 %v759_v4, %v291_v6 }
  0x39   : > { %v389_v43 = vadd.f32 %v388_v33, %v353_v34  ;;  %s984_s10 = scalar_lea.hbm %s1316_s2, 16 }
  0x3a   : > { %v293_v11 = vmul.f32 1.442695, %v292_v7  ;;  %v296_v12 = vmul.f32 1.442695, %v295_v8  ;;  %v299_v13 = vmul.f32 1.442695, %v298_v9 }
  0x3b   : > { %v302_v14 = vmul.f32 1.442695, %v301_v10  ;;  %v425_v49 = vadd.f32 %v424_v44, %v389_v43 }
  0x3c   : > { %884 = vpow2.f32 %v293_v11 }
  0x3d   : > { %886 = vpow2.f32 %v296_v12 }
  0x3e   : > { %888 = vpow2.f32 %v299_v13 }
  0x3f   : > { %890 = vpow2.f32 %v302_v14 }
  0x42   : > { %v885_v15 = vpop.eup %884 }
  0x43   : > { %v887_v16 = vpop.eup %886 }
  0x44   : > { %v889_v17 = vpop.eup %888  ;;  %v304_v18 = vadd.f32 %v887_v16, %v885_v15 }
  0x45   : > { %v891_v19 = vpop.eup %890 }
  0x46   : > { %v305_v20 = vadd.f32 %v889_v17, %v304_v18 }
  0x48   : > { %v306_v22 = vadd.f32 %v891_v19, %v305_v20 }
  0x4a   : > { %892 = vrcp.f32 %v306_v22 }
  0x4b   : > { %894 = vlog2.f32 %v306_v22 }
  0x50   : > { %v893_v28 = vpop.eup %892 }
  0x51   : > { %v387_v30 = vmul.f32 %v893_v28, %v889_v17  ;;  %v351_v31 = vmul.f32 %v893_v28, %v887_v16  ;;  %v314_v32 = vmul.f32 %v893_v28, %v885_v15  ;;  %v895_v38 = vpop.eup %894  ;;  %v423_v52 = vmul.f32 %v893_v28, %v891_v19 }
  0x52   : > { %v309_v47 = vmul.f32 0.6931472, %v895_v38 }
  0x53   : > { %v391_v35 = vmul.f32 %v764_v29, %v387_v30  ;;  %v355_v36 = vmul.f32 %v761_v24, %v351_v31  ;;  %v318_v37 = vmul.f32 %v760_v25, %v314_v32  ;;  %v406_v45 = vadd.f32 %v764_v29, %v387_v30 }
  0x54   : > { %v370_v46 = vadd.f32 %v761_v24, %v351_v31  ;;  %v334_v48 = vadd.f32 %v760_v25, %v314_v32  ;;  %v310_v53 = vadd.f32 %v309_v47, %v291_v6  ;;  %v442_v55 = vadd.f32 %v767_v42, %v423_v52 }
  0x55   : > { %v392_v39 = vsel %vm319_vm3, %v391_v35, 0.0  ;;  %v356_v40 = vsel %vm319_vm3, %v355_v36, 0.0  ;;  %v320_v41 = vsel %vm319_vm3, %v318_v37, 0.0  ;;  %v407_v50 = vsel %vm319_vm3, %v406_v45, 0.0 }
  0x56   : > { %393 = vadd.xlane.f32.xlu2 %v392_v39  ;;  %357 = vadd.xlane.f32.xlu1 %v356_v40  ;;  %v371_v51 = vsel %vm319_vm3, %v370_v46, 0.0  ;;  %v335_v54 = vsel %vm319_vm3, %v334_v48, 0.0  ;;  %v456_v56 = vsub.f32 %v310_v53, %v425_v49  ;;  %v427_v57 = vmul.f32 %v767_v42, %v423_v52 }
  0x57   : > { %321 = vadd.xlane.f32.xlu0 %v320_v41  ;;  %v443_v58 = vsel %vm319_vm3, %v442_v55, 0.0 }
  0x58   : > { %v458_v59 = vsel %vm319_vm3, %v456_v56, 0.0  ;;  %v428_v60 = vsel %vm319_vm3, %v427_v57, 0.0 }
  0x5e   : > { %408 = vadd.xlane.f32.xlu2 %v407_v50  ;;  %372 = vadd.xlane.f32.xlu1 %v371_v51 }
  0x5f   : > { %336 = vadd.xlane.f32.xlu0 %v335_v54 }
  0x66   : > { %444 = vadd.xlane.f32.xlu1 %v443_v58  ;;  %459 = vadd.xlane.f32.xlu2 %v458_v59 }
  0x67   : > { %429 = vadd.xlane.f32.xlu0 %v428_v60 }
  0xc9   : > { %v394_v61 = vpop.xlane.xlu2 %393  ;;  %v358_v62 = vpop.xlane.xlu1 %357 }
  0xca   : > { %v359_v63 = vrot.slane %v358_v62, 4  ;;  %v322_v0 = vpop.xlane.xlu0 %321  ;;  %v395_v2 = vrot.slane %v394_v61, 4 }
  0xcb   : > { %v323_v1 = vrot.slane %v322_v0, 4 }
  0xcc   : > { %v360_v4 = vadd.f32 %v359_v63, %v358_v62  ;;  %v396_v6 = vadd.f32 %v395_v2, %v394_v61 }
  0xcd   : > { %v324_v3 = vadd.f32 %v323_v1, %v322_v0 }
  0xce   : > { %v361_v10 = vrot.slane %v360_v4, 2  ;;  %v397_v16 = vrot.slane %v396_v6, 2 }
  0xcf   : > { %v325_v5 = vrot.slane %v324_v3, 2 }
  0xd0   : > { %v362_v23 = vadd.f32 %v361_v10, %v360_v4  ;;  %v398_v26 = vadd.f32 %v397_v16, %v396_v6 }
  0xd1   : > { %v409_v7 = vpop.xlane.xlu2 %408  ;;  %v373_v8 = vpop.xlane.xlu1 %372  ;;  %v326_v9 = vadd.f32 %v325_v5, %v324_v3 }
  0xd2   : > { %v410_v11 = vrot.slane %v409_v7, 4  ;;  %v374_v12 = vrot.slane %v373_v8, 4  ;;  %v337_v13 = vpop.xlane.xlu0 %336  ;;  %v363_v32 = vrot.slane %v362_v23, 1  ;;  %v399_v38 = vrot.slane %v398_v26, 1 }
  0xd3   : > { %v338_v14 = vrot.slane %v337_v13, 4  ;;  %v327_v15 = vrot.slane %v326_v9, 1 }
  0xd4   : > { %v411_v17 = vadd.f32 %v410_v11, %v409_v7  ;;  %v375_v18 = vadd.f32 %v374_v12, %v373_v8  ;;  %v364_v43 = vadd.f32 %v363_v32, %v362_v23  ;;  %v400_v47 = vadd.f32 %v399_v38, %v398_v26 }
  0xd5   : > { %v339_v19 = vadd.f32 %v338_v14, %v337_v13  ;;  %v328_v20 = vadd.f32 %v327_v15, %v326_v9 }
  0xd6   : > { %v412_v21 = vrot.slane %v411_v17, 2  ;;  %v376_v22 = vrot.slane %v375_v18, 2 }
  0xd7   : > { %v340_v24 = vrot.slane %v339_v19, 2  ;;  %783 = vpush %v328_v20 }
  0xd8   : > { %v377_v25 = vadd.f32 %v376_v22, %v375_v18  ;;  %v413_v27 = vadd.f32 %v412_v21, %v411_v17 }
  0xd9   : > { %v445_v28 = vpop.xlane.xlu1 %444  ;;  %v341_v29 = vadd.f32 %v340_v24, %v339_v19  ;;  %v460_v53 = vpop.xlane.xlu2 %459 }
  0xda   : > { %v446_v30 = vrot.slane %v445_v28, 4  ;;  %v430_v31 = vpop.xlane.xlu0 %429  ;;  %v378_v33 = vrot.slane %v377_v25, 1  ;;  %v414_v36 = vrot.slane %v413_v27, 1  ;;  %v461_v54 = vrot.slane %v460_v53, 4 }
  0xdb   : > { %v431_v34 = vrot.slane %v430_v31, 4  ;;  %v342_v35 = vrot.slane %v341_v29, 1 }
  0xdc   : > { %v447_v37 = vadd.f32 %v446_v30, %v445_v28  ;;  %v379_v41 = vadd.f32 %v378_v33, %v377_v25  ;;  %v415_v45 = vadd.f32 %v414_v36, %v413_v27  ;;  %v462_v55 = vadd.f32 %v461_v54, %v460_v53 }
  0xdd   : > { %v432_v39 = vadd.f32 %v431_v34, %v430_v31  ;;  %v343_v40 = vadd.f32 %v342_v35, %v341_v29 }
  0xde   : > { %v448_v42 = vrot.slane %v447_v37, 2  ;;  %v463_v56 = vrot.slane %v462_v55, 2 }
  0xdf   : > { %v433_v44 = vrot.slane %v432_v39, 2  ;;  %785 = vpush %v343_v40 }
  0xe0   : > { %v449_v46 = vadd.f32 %v448_v42, %v447_v37  ;;  %787 = vpush %v364_v43  ;;  %v464_v57 = vadd.f32 %v463_v56, %v462_v55 }
  0xe1   : > { %v434_v48 = vadd.f32 %v433_v44, %v432_v39  ;;  %789 = vpush %v379_v41 }
  0xe2   : > { %791 = vpush %v400_v47  ;;  %v450_v49 = vrot.slane %v449_v46, 1  ;;  %v465_v58 = vrot.slane %v464_v57, 1 }
  0xe3   : > { %793 = vpush %v415_v45  ;;  %v435_v50 = vrot.slane %v434_v48, 1 }
  0xe4   : > { %v451_v51 = vadd.f32 %v450_v49, %v449_v46  ;;  %v466_v59 = vadd.f32 %v465_v58, %v464_v57 }
  0xe5   : > { %v436_v52 = vadd.f32 %v435_v50, %v434_v48 }
  0xe7   : > { %795 = vpush %v436_v52 }
  0xe8   : > { %797 = vpush %v451_v51 }
  0xe9   : > { %799 = vpush %v466_v59 }
 0x108   : > { %s1219_s24 = spop %783 }
 0x110   : > { %s786_s21 = spop %785 }
 0x111   : > { %s478_s23 = sadd.f32 1e-06, %s786_s21  ;;  %s1221_s29 = spop %787 }
 0x112   : > { %s790_s30 = spop %789  ;;  %s587_s21 = scalar_lea.hbm %s1316_s2, %s1293_s28 }
 0x113   : > { %v479_v60 = vstv %s478_s23  ;;  %s501_s22 = sadd.f32 1e-06, %s790_s30  ;;  %s1223_s4 = spop %791 }
 0x114   : > { %896 = vrcp.f32 %v479_v60  ;;  %s794_s5 = spop %793  ;;  %v489_v5 = vand.u32 2147483647, %v479_v60  ;;  %v491_v6 = vand.u32 2147483648, %v479_v60  ;;  %vm485_vm6 = vweird.f32 %v479_v60  ;;  %s251_s23 = scalar_lea.vmem [#allocation10], %s1196_s9 }
 0x115   : > { %v502_v61 = vstv %s501_s22  ;;  %s524_s6 = sadd.f32 1e-06, %s794_s5  ;;  %s589_s30 = sshll.u32 %s251_s23, 4  ;;  %s590_s30 = int_to_ptr.vmem [resolvable:$true] %s589_s30 }
 0x116   : > { %898 = vrcp.f32 %v502_v61  ;;  %v512_v9 = vand.u32 2147483647, %v502_v61  ;;  %v514_v11 = vand.u32 2147483648, %v502_v61  ;;  %vm490_vm9 = vcmp.eq.f32.partialorder %v489_v5, 8.507059e+37  ;;  %s591_s22 = sshll.u32 %s587_s21, 4  ;;  %s592_s22 = int_to_ptr.hbm [resolvable:$true] %s591_s22 }
 0x117   : > { %v525_v62 = vstv %s524_s6  ;;  %v492_v15 = vor.u32 1.1754944e-38, %v491_v6  ;;  %vm508_vm10 = vweird.f32 %v502_v61  ;;  %s572_s6 = scalar_lea.sflag [#allocation7], %s1193_s8 }
 0x118   : > { %s1225_s7 = spop %795  ;;  %900 = vrcp.f32 %v525_v62  ;;  %vm513_vm11 = vcmp.eq.f32.partialorder %v512_v9, 8.507059e+37  ;;  %v515_v22 = vor.u32 1.1754944e-38, %v514_v11  ;;  %v537_v23 = vand.u32 2147483648, %v525_v62 }
 0x119   : > { %s798_s11 = spop %797  ;;  %v535_v26 = vand.u32 2147483647, %v525_v62  ;;  %vm531_vm14 = vweird.f32 %v525_v62 }
 0x11a   : > { %v897_v63 = vpop.eup %896  ;;  %s547_s18 = sadd.f32 1e-06, %s798_s11  ;;  %v538_v31 = vor.u32 1.1754944e-38, %v537_v23  ;;  %s800_s5 = spop %799 }
 0x11b   : > { %v481_v0 = vmul.f32 %v897_v63, %v479_v60  ;;  %vm486_vm5 = vweird.f32 %v897_v63  ;;  %vm536_vm1 = vcmp.eq.f32.partialorder %v535_v26, 8.507059e+37  ;;  %v567_v40 = vstv %s800_s5  ;;  %s978_s11 = sshra.s32 %s592_s22, 4  ;;  %s979_s11 = int_to_ptr.hbm [resolvable:$true] %s978_s11 }
 0x11c   : > { %v899_v1 = vpop.eup %898  ;;  %v548_v2 = vstv %s547_s18  ;;  %vm487_vm8 = vmor %vm485_vm6, %vm486_vm5  ;;  %568 = vst [vmem:[%s251_s23] sm:$0xff] %v567_v40  ;;  %s980_s18 = scalar_lea.hbm %s979_s11, 8  ;;  %p985_p7 = scmp.lt.s32.totalorder %s979_s11, %s1316_s2 }
 0x11d   : > { %v482_v3 = vsub.f32 1.0, %v481_v0  ;;  %v504_v4 = vmul.f32 %v899_v1, %v502_v61  ;;  %902 = vrcp.f32 %v548_v2  ;;  %vm509_vm7 = vweird.f32 %v899_v1  ;;  %p981_p4 = scmp.ne.s32.totalorder %s979_s11, %s980_s18  ;;  %p986_p8 = scmp.lt.s32.totalorder %s984_s10, %s980_s18 }
 0x11e   : > { %v901_v10 = vpop.eup %900  ;;  %vm510_vm12 = vmor %vm508_vm10, %vm509_vm7  ;;  %v560_v30 = vand.u32 2147483648, %v548_v2  ;;  %v558_v33 = vand.u32 2147483647, %v548_v2  ;;  %vm554_vm2 = vweird.f32 %v548_v2 }
 0x11f   : > { %v505_v7 = vsub.f32 1.0, %v504_v4  ;;  %v483_v8 = vmul.f32 %v897_v63, %v482_v3  ;;  %v527_v12 = vmul.f32 %v901_v10, %v525_v62  ;;  %vm532_vm13 = vweird.f32 %v901_v10  ;;  %p982_p5 = pnand %p981_p4, %p1158_p9  ;;  %p987_p10 = por %p986_p8, %p985_p7 }
 0x120   : > { %vm533_vm15 = vmor %vm531_vm14, %vm532_vm13  ;;  %v561_v37 = vor.u32 1.1754944e-38, %v560_v30  ;;  %vm559_vm4 = vcmp.eq.f32.partialorder %v558_v33, 8.507059e+37 }
 0x121   : > { %v484_v13 = vadd.f32 %v897_v63, %v483_v8  ;;  %v506_v14 = vmul.f32 %v899_v1, %v505_v7  ;;  %v528_v17 = vsub.f32 1.0, %v527_v12  ;;  %p983_p6 = pneg %p982_p5 }
 0x123   : > { %v903_v16 = vpop.eup %902  ;;  %v488_v18 = vsel %vm487_vm8, %v897_v63, %v484_v13  ;;  %v507_v19 = vadd.f32 %v899_v1, %v506_v14  ;;  %v529_v25 = vmul.f32 %v901_v10, %v528_v17  ;;  %p988_p13 = pnand %p987_p10, %p983_p6 }
 0x124   : > { %v550_v20 = vmul.f32 %v903_v16, %v548_v2  ;;  %v493_v21 = vsel %vm490_vm9, %v492_v15, %v488_v18  ;;  %vm555_vm0 = vweird.f32 %v903_v16 }
 0x125   : > { %801 = vpush %v493_v21  ;;  %v511_v24 = vsel %vm510_vm12, %v899_v1, %v507_v19  ;;  %v530_v29 = vadd.f32 %v901_v10, %v529_v25  ;;  %vm556_vm3 = vmor %vm554_vm2, %vm555_vm0 }
 0x126   : > { %v551_v27 = vsub.f32 1.0, %v550_v20  ;;  %v516_v28 = vsel %vm513_vm11, %v515_v22, %v511_v24 }
 0x127   : > { %803 = vpush %v516_v28  ;;  %v534_v34 = vsel %vm533_vm15, %v901_v10, %v530_v29 }
 0x128   : > { %v552_v32 = vmul.f32 %v903_v16, %v551_v27  ;;  %v539_v35 = vsel %vm536_vm1, %v538_v31, %v534_v34 }
 0x129   : > { %805 = vpush %v539_v35 }
 0x12a   : > { %v553_v36 = vadd.f32 %v903_v16, %v552_v32 }
 0x12c   : > { %v557_v38 = vsel %vm556_vm3, %v903_v16, %v553_v36 }
 0x12d   : > { %v562_v39 = vsel %vm559_vm4, %v561_v37, %v557_v38 }
 0x12e   : > { %807 = vpush %v562_v39 }
 0x12f   : > { %991 = shalt.err (!%p988_p13)
}
 0x130   : > { %813 = dma.vmem_to_hbm [thread:$0]  (%p1158_p9), %s590_s30, 128, %s592_s22, %s572_s6  }
 0x131   : > { %s475_s21 = smul.f32 2.0, %s1219_s24  ;;  %s1317_s14 = sshll.u32 %s1074_s15, 3 }
 0x132   : > { %s498_s0 = smul.f32 2.0, %s1221_s29  ;;  %s601_s24 = scalar_lea.hbm %s1292_s3, %s1317_s14 }
 0x133   : > { %s476_s1 = sadd.f32 1e-06, %s475_s21  ;;  %s521_s23 = smul.f32 2.0, %s1223_s4 }
 0x134   : > { %s499_s28 = sadd.f32 1e-06, %s498_s0  ;;  %s544_s2 = smul.f32 2.0, %s1225_s7 }
 0x135   : > { %s522_s19 = sadd.f32 1e-06, %s521_s23  ;;  %s258_s29 = scalar_lea.vmem [#allocation11], %s1196_s9 }
 0x136   : > { %s545_s30 = sadd.f32 1e-06, %s544_s2  ;;  %s603_s4 = sshll.u32 %s258_s29, 4  ;;  %s604_s4 = int_to_ptr.vmem [resolvable:$true] %s603_s4 }
 0x137   : > { %s605_s0 = sshll.u32 %s601_s24, 4  ;;  %s577_s7 = scalar_lea.sflag [#allocation12], %s1193_s8  ;;  %s606_s0 = int_to_ptr.hbm [resolvable:$true] %s605_s0 }
 0x138   : > { %s1012_s14 = scalar_lea.hbm %s1292_s3, 16 }
 0x156   : > { %s802_s5 = spop %801 }
 0x157   : > { %s495_s11 = smul.f32 %s802_s5, %s476_s1 }
 0x158   : > { %s804_s18 = spop %803 }
 0x159   : > { %s518_s10 = smul.f32 %s804_s18, %s499_s28 }
 0x15a   : > { %s806_s16 = spop %805 }
 0x15b   : > { %s519_s20 = sadd.f32 %s518_s10, %s495_s11  ;;  %s541_s26 = smul.f32 %s806_s16, %s522_s19 }
 0x15c   : > { %s1006_s16 = sshra.s32 %s606_s0, 4  ;;  %s1007_s16 = int_to_ptr.hbm [resolvable:$true] %s1006_s16 }
 0x15d   : > { %s542_s22 = sadd.f32 %s541_s26, %s519_s20  ;;  %s1008_s15 = scalar_lea.hbm %s1007_s16, 8 }
 0x15e   : > { %p1009_p0 = scmp.ne.s32.totalorder %s1007_s16, %s1008_s15  ;;  %p1013_p3 = scmp.lt.s32.totalorder %s1007_s16, %s1292_s3 }
 0x15f   : > { %s808_s6 = spop %807  ;;  %p1014_p4 = scmp.lt.s32.totalorder %s1012_s14, %s1008_s15 }
 0x160   : > { %s564_s21 = smul.f32 %s808_s6, %s545_s30  ;;  %p1010_p1 = pnand %p1009_p0, %p1158_p9 }
 0x161   : > { %p1015_p5 = por %p1014_p4, %p1013_p3 }
 0x162   : > { %s565_s1 = sadd.f32 %s564_s21, %s542_s22  ;;  %p1011_p2 = pneg %p1010_p1 }
 0x164   : > { %v569_v41 = vstv %s565_s1  ;;  %p1016_p6 = pnand %p1015_p5, %p1011_p2 }
 0x165   : > { %570 = vst [vmem:[%s258_s29] sm:$0xff] %v569_v41 }
 0x166   : > { %1019 = shalt.err (!%p1016_p6)
}
 0x167   : > { %814 = dma.vmem_to_hbm [thread:$0]  (%p1158_p9), %s604_s4, 128, %s606_s0, %s577_s7  }
 0x168 PF: > { %s1318_s26 = sld [smem:[#allocation20_spill]]  ;;  %s617_s8 = sand.u32 1, %s1062_s12  }
 0x169   : > { %p825_p7 = pnand %p746_p12, %p1165_p11  ;;  %s618_s9 = scalar_lea.sflag [#allocation7], %s617_s8 }
 0x16b   : > { %p826_p8 = pneg %p825_p7 }
 0x16d   : > { %1053 = dma.done.wait (%p826_p8), %s618_s9, 128  }
 0x16e   : > { %1055 = vsyncadd (%p826_p8), %s618_s9, 4294967168  ;;  %s628_s23 = scalar_lea.sflag [#allocation12], %s617_s8 }
 0x16f   : > { %1057 = dma.done.wait (%p826_p8), %s628_s23, 128  }
 0x170   : > { %1059 = vsyncadd (%p826_p8), %s628_s23, 4294967168  ;;  %s26_s17 = sadd.s32 1, %s1318_s26   ;;  %s1319_s12 = sld [smem:[#allocation17_spill]] }
 0x171   : > { %p23_p10 = scmp.ge.s32.totalorder %s26_s17, 4   ;;  %s1320_s13 = sld [smem:[#allocation18_spill]] }
 0x172   : > { %s1321_s14 = sld [smem:[#allocation22_spill]] }
 0x173   : > { %s1322_s15 = sld [smem:[#allocation19_spill]]  ;;  %25 = sbr.rel (!%p23_p10) target bundleno = 14 (0xe), region = 132 }
 0x174   : > { %s1323_s16 = sld [smem:[#allocation21_spill]] }
 0x178   :  { %634 = vsyncpa [#allocation6], 1 }
 0x179   :  { %636 = vsyncpa [#allocation6 + $0x1], 1 }
 0x17a   :  { %637 = vsyncpa [#allocation9], 1 }
 0x17b   :  { %639 = vsyncpa [#allocation9 + $0x1], 1 }
 0x17c   :  { %640 = vsyncpa [#allocation7], 1 }
 0x17d   :  { %642 = vsyncpa [#allocation7 + $0x1], 1 }
 0x17e   :  { %643 = vsyncpa [#allocation12], 1 }
 0x17f   :  { %645 = vsyncpa [#allocation12 + $0x1], 1 }

</bundles_post_ra>
